<compile_context>
chip_gen: v6e
topology: v6e:2x2x1
jax: 0.10.0
libtpu: 0.0.40
codegen_flags: <defaults>
</compile_context>

<pallas_src>
import math

import jax
import jax.numpy as jnp
from jax.experimental import pallas as pl
from jax.experimental.pallas import tpu as pltpu

_LANES = 128
_SUBLANES = 8
_TILE = _LANES * _SUBLANES  # 1024 elements


def _add_kernel(a_ref, b_ref, o_ref):
    o_ref[...] = a_ref[...] + b_ref[...]


def _add_2d(a2d, b2d):
    rows, cols = a2d.shape
    total = rows * cols
    itemsize = jnp.dtype(a2d.dtype).itemsize
    return pl.pallas_call(
        _add_kernel,
        out_shape=jax.ShapeDtypeStruct((rows, cols), a2d.dtype),
        grid_spec=pl.GridSpec(
            grid=(1,),
            in_specs=[
                pl.BlockSpec((rows, cols), lambda i: (0, 0)),
                pl.BlockSpec((rows, cols), lambda i: (0, 0)),
            ],
            out_specs=pl.BlockSpec((rows, cols), lambda i: (0, 0)),
        ),
        cost_estimate=pl.CostEstimate(
            flops=total,
            transcendentals=0,
            bytes_accessed=3 * total * itemsize,
        ),
    )(a2d, b2d)


def pallas_add(x149, x139):
    assert x149.shape == x139.shape and x149.dtype == x139.dtype
    orig_shape = x149.shape
    total = math.prod(orig_shape)

    if total % _TILE == 0:
        # Lane-dense layout: last dim == 128 lanes, rows a multiple of 8.
        rows = total // _LANES
        out2d = _add_2d(x149.reshape(rows, _LANES), x139.reshape(rows, _LANES))
        return out2d.reshape(orig_shape)

    # Fallback: flatten, pad up to a multiple of 8*128 so the kernel still
    # sees a lane-dense (rows, 128) slab with unmasked full-width stores,
    # then slice the padding back off.
    padded = ((total + _TILE - 1) // _TILE) * _TILE
    pad = padded - total
    a1d = jnp.pad(x149.reshape(-1), (0, pad))
    b1d = jnp.pad(x139.reshape(-1), (0, pad))
    rows = padded // _LANES
    out2d = _add_2d(a1d.reshape(rows, _LANES), b1d.reshape(rows, _LANES))
    return out2d.reshape(-1)[:total].reshape(orig_shape)


if __name__ == "__main__":
    key = jax.random.PRNGKey(0)
    k1, k2, k3, k4 = jax.random.split(key, 4)

    # Shapes consistent with the module's forward: [1, 512, 14, 14]
    x149 = jax.random.normal(k1, (1, 512, 14, 14), dtype=jnp.float32)
    x139 = jax.random.normal(k2, (1, 512, 14, 14), dtype=jnp.float32)

    out = pallas_add(x149, x139)
    jax.block_until_ready(out)

    ref = x149 + x139
    assert out.shape == ref.shape
    assert jnp.allclose(out, ref, atol=1e-6, rtol=1e-6)

    # Also exercise the padded (non-multiple-of-1024) fallback path.
    a_small = jax.random.normal(k3, (2, 4, 7, 5), dtype=jnp.float32)
    b_small = jax.random.normal(k4, (2, 4, 7, 5), dtype=jnp.float32)
    out_small = pallas_add(a_small, b_small)
    jax.block_until_ready(out_small)
    assert jnp.allclose(out_small, a_small + b_small, atol=1e-6, rtol=1e-6)

    print("KERNEL_OK")
</pallas_src>

<mosaic_0001>
module attributes {stable_mosaic.version = 11 : i64} {
  func.func @_add_kernel(%arg0: i32, %arg1: memref<784x128xf32, #tpu.memory_space<vmem>>, %arg2: memref<784x128xf32, #tpu.memory_space<vmem>>, %arg3: memref<784x128xf32, #tpu.memory_space<vmem>>) attributes {dimension_semantics = [#tpu.dimension_semantics<arbitrary>], iteration_bounds = array<i64: 1>, scalar_prefetch = 0 : i64, scratch_operands = 0 : i64, tpu.core_type = #tpu.core_type<tc>, window_params = [{pipeline_mode = #tpu.pipeline_mode<synchronous>, transform_indices = @transform_0, window_bounds = array<i64: 784, 128>}, {pipeline_mode = #tpu.pipeline_mode<synchronous>, transform_indices = @transform_1, window_bounds = array<i64: 784, 128>}, {pipeline_mode = #tpu.pipeline_mode<synchronous>, transform_indices = @transform_2, window_bounds = array<i64: 784, 128>}]} {
    %c0 = arith.constant 0 : index
    %c0_0 = arith.constant 0 : index
    %0 = vector.load %arg1[%c0, %c0_0] : memref<784x128xf32, #tpu.memory_space<vmem>>, vector<784x128xf32>
    %c0_1 = arith.constant 0 : index
    %c0_2 = arith.constant 0 : index
    %1 = vector.load %arg2[%c0_1, %c0_2] : memref<784x128xf32, #tpu.memory_space<vmem>>, vector<784x128xf32>
    %2 = arith.addf %0, %1 : vector<784x128xf32>
    %c0_3 = arith.constant 0 : index
    %c0_4 = arith.constant 0 : index
    %3 = vector.load %arg3[%c0_3, %c0_4] : memref<784x128xf32, #tpu.memory_space<vmem>>, vector<784x128xf32>
    tpu.vector_store %arg3[%c0_3, %c0_4], %2 {strides = array<i32>} : memref<784x128xf32, #tpu.memory_space<vmem>>, vector<784x128xf32>,
    return
  }
  func.func @transform_0(%arg0: i32) -> (i32, i32) {
    %c0_i32 = arith.constant 0 : i32
    %c0_i32_0 = arith.constant 0 : i32
    %c0_i32_1 = arith.constant 0 : i32
    return %c0_i32, %c0_i32_0 : i32, i32
  }
  func.func @transform_1(%arg0: i32) -> (i32, i32) {
    %c0_i32 = arith.constant 0 : i32
    %c0_i32_0 = arith.constant 0 : i32
    %c0_i32_1 = arith.constant 0 : i32
    return %c0_i32, %c0_i32_0 : i32, i32
  }
  func.func @transform_2(%arg0: i32) -> (i32, i32) {
    %c0_i32 = arith.constant 0 : i32
    %c0_i32_0 = arith.constant 0 : i32
    %c0_i32_1 = arith.constant 0 : i32
    return %c0_i32, %c0_i32_0 : i32, i32
  }
}

</mosaic_0001>

<bundles_post_ra>
// kernel: tpu_custom_call.1
= control target key start
LH: loop header
LB: loop body
LE: loop exit
PB: predicated region body
PF: predicated region fallthrough
CT: control target
= control target key end

     0   :  { %7 = vsyncpa [#allocation3], 0  ;;  %s559_s0 = inlined_call_operand.hbm [shape: f32[784,128], index: 0, kind: input, shape index: {}]   ;;  %s560_s1 = inlined_call_operand.hbm [shape: f32[784,128], index: 1, kind: input, shape index: {}]   ;;  %s561_s2 = inlined_call_operand.hbm [shape: f32[784,128], index: 2, kind: output, shape index: {}]  }
   0x1   :  { %8 = vsyncpa [#allocation6], 0 }
   0x2   :  { %9 = vsyncpa [#allocation4], 0  ;;  %s521_s9 = smov [#allocation2]  }
   0x3   :  { %s15_s10 = sshll.u32 %s521_s9, 4  ;;  %s16_s10 = int_to_ptr.vmem [resolvable:$true] %s15_s10 }
   0x4   :  { %s463_s11 = scalar_lea.vmem %s16_s10, 12544  ;;  %p468_p1 = scmp.lt.s32.totalorder %s16_s10, %s16_s10 }
   0x5   :  { %p464_p0 = scmp.ne.s32.totalorder %s16_s10, %s463_s11  ;;  %p469_p2 = scmp.lt.s32.totalorder %s463_s11, %s463_s11 }
   0x7   :  { %p470_p3 = por %p469_p2, %p468_p1 }
   0x9   :  { %p471_p4 = pnand %p470_p3, %p464_p0 }
   0xb   :  { %474 = shalt.err (!%p471_p4)
}
   0xc   :  { %s522_s12 = smov 128   ;;  %s523_s13 = smov 8  }
   0xd   :  { %21 = dma.hbm_to_vmem [thread:$0]  %s559_s0, 12544, %s16_s10, [#allocation3], %s522_s12, %s522_s12, %s523_s13  }
   0xe   :  { %s524_s16 = smov [#allocation5]  }
   0xf   :  { %s27_s17 = sshll.u32 %s524_s16, 4  ;;  %s28_s17 = int_to_ptr.vmem [resolvable:$true] %s27_s17 }
  0x10   :  { %s483_s18 = scalar_lea.vmem %s28_s17, 12544  ;;  %p488_p6 = scmp.lt.s32.totalorder %s28_s17, %s28_s17 }
  0x11   :  { %p484_p5 = scmp.ne.s32.totalorder %s28_s17, %s483_s18  ;;  %p489_p7 = scmp.lt.s32.totalorder %s483_s18, %s483_s18 }
  0x13   :  { %p490_p8 = por %p489_p7, %p488_p6 }
  0x15   :  { %p491_p9 = pnand %p490_p8, %p484_p5 }
  0x17   :  { %494 = shalt.err (!%p491_p9)
}
  0x18   :  { %33 = dma.hbm_to_vmem [thread:$0]  %s560_s1, 12544, %s28_s17, [#allocation6], %s522_s12, %s522_s12, %s523_s13  }
  0x19   :  { %515 = dma.done.wait [#allocation3], 12544  }
  0x1a   :  { %516 = vsyncadd [#allocation3], 4294954752 }
  0x1b   :  { %517 = dma.done.wait [#allocation6], 12544  }
  0x1c   :  { %518 = vsyncadd [#allocation6], 4294954752  ;;  %v40_v0 = vld [vmem:[#allocation2] sm:$0xff]  ;;  %v138_v1 = vld [vmem:[#allocation5] sm:$0xff]  ;;  %s525_s0 = smov [#allocation7]  }
  0x1d   :  { %v41_v2 = vld [vmem:[#allocation2 + $0x8] sm:$0xff]  ;;  %v236_v3 = vadd.f32 %v138_v1, %v40_v0  ;;  %v139_v4 = vld [vmem:[#allocation5 + $0x8] sm:$0xff]  ;;  %v42_v5 = vld [vmem:[#allocation2 + $0x10] sm:$0xff]  ;;  %s437_s1 = sshll.u32 %s525_s0, 4  ;;  %s438_s1 = int_to_ptr.vmem [resolvable:$true] %s437_s1 }
  0x1e   :  { %v140_v6 = vld [vmem:[#allocation5 + $0x10] sm:$0xff]  ;;  %v237_v7 = vadd.f32 %v139_v4, %v41_v2  ;;  %v43_v9 = vld [vmem:[#allocation2 + $0x18] sm:$0xff]  ;;  %v141_v10 = vld [vmem:[#allocation5 + $0x18] sm:$0xff]  ;;  %s495_s21 = scalar_lea.vmem %s438_s1, 12544  ;;  %p500_p11 = scmp.lt.s32.totalorder %s438_s1, %s438_s1 }
  0x1f   :  { %v238_v8 = vadd.f32 %v140_v6, %v42_v5  ;;  %v44_v11 = vld [vmem:[#allocation2 + $0x20] sm:$0xff]  ;;  %334 = vst [vmem:[#allocation7] sm:$0xff] %v236_v3  ;;  %v239_v12 = vadd.f32 %v141_v10, %v43_v9  ;;  %v142_v13 = vld [vmem:[#allocation5 + $0x20] sm:$0xff]  ;;  %v45_v14 = vld [vmem:[#allocation2 + $0x28] sm:$0xff]  ;;  %p496_p10 = scmp.ne.s32.totalorder %s438_s1, %s495_s21  ;;  %p501_p12 = scmp.lt.s32.totalorder %s495_s21, %s495_s21 }
  0x20   :  { %v143_v15 = vld [vmem:[#allocation5 + $0x28] sm:$0xff]  ;;  %335 = vst [vmem:[#allocation7 + $0x8] sm:$0xff] %v237_v7  ;;  %v240_v16 = vadd.f32 %v142_v13, %v44_v11  ;;  %v46_v18 = vld [vmem:[#allocation2 + $0x30] sm:$0xff]  ;;  %v144_v19 = vld [vmem:[#allocation5 + $0x30] sm:$0xff] }
  0x21   :  { %336 = vst [vmem:[#allocation7 + $0x10] sm:$0xff] %v238_v8  ;;  %v241_v17 = vadd.f32 %v143_v15, %v45_v14  ;;  %v47_v20 = vld [vmem:[#allocation2 + $0x38] sm:$0xff]  ;;  %337 = vst [vmem:[#allocation7 + $0x18] sm:$0xff] %v239_v12  ;;  %v242_v21 = vadd.f32 %v144_v19, %v46_v18  ;;  %v145_v22 = vld [vmem:[#allocation5 + $0x38] sm:$0xff]  ;;  %p502_p13 = por %p501_p12, %p500_p11 }
  0x22   :  { %v48_v23 = vld [vmem:[#allocation2 + $0x40] sm:$0xff]  ;;  %v146_v24 = vld [vmem:[#allocation5 + $0x40] sm:$0xff]  ;;  %338 = vst [vmem:[#allocation7 + $0x20] sm:$0xff] %v240_v16  ;;  %v243_v25 = vadd.f32 %v145_v22, %v47_v20  ;;  %v49_v27 = vld [vmem:[#allocation2 + $0x48] sm:$0xff] }
  0x23   :  { %339 = vst [vmem:[#allocation7 + $0x28] sm:$0xff] %v241_v17  ;;  %v244_v26 = vadd.f32 %v146_v24, %v48_v23  ;;  %v147_v28 = vld [vmem:[#allocation5 + $0x48] sm:$0xff]  ;;  %v50_v29 = vld [vmem:[#allocation2 + $0x50] sm:$0xff]  ;;  %340 = vst [vmem:[#allocation7 + $0x30] sm:$0xff] %v242_v21  ;;  %p503_p0 = pnand %p502_p13, %p496_p10 }
  0x24   :  { %v245_v30 = vadd.f32 %v147_v28, %v49_v27  ;;  %v148_v31 = vld [vmem:[#allocation5 + $0x50] sm:$0xff]  ;;  %v51_v32 = vld [vmem:[#allocation2 + $0x58] sm:$0xff]  ;;  %v149_v33 = vld [vmem:[#allocation5 + $0x58] sm:$0xff]  ;;  %341 = vst [vmem:[#allocation7 + $0x38] sm:$0xff] %v243_v25 }
  0x25   :  { %342 = vst [vmem:[#allocation7 + $0x40] sm:$0xff] %v244_v26  ;;  %v246_v34 = vadd.f32 %v148_v31, %v50_v29  ;;  %v247_v35 = vadd.f32 %v149_v33, %v51_v32  ;;  %v52_v36 = vld [vmem:[#allocation2 + $0x60] sm:$0xff]  ;;  %v150_v37 = vld [vmem:[#allocation5 + $0x60] sm:$0xff]  ;;  %v53_v38 = vld [vmem:[#allocation2 + $0x68] sm:$0xff] }
  0x26   :  { %343 = vst [vmem:[#allocation7 + $0x48] sm:$0xff] %v245_v30  ;;  %v248_v39 = vadd.f32 %v150_v37, %v52_v36  ;;  %v151_v40 = vld [vmem:[#allocation5 + $0x68] sm:$0xff]  ;;  %v54_v41 = vld [vmem:[#allocation2 + $0x70] sm:$0xff]  ;;  %v152_v42 = vld [vmem:[#allocation5 + $0x70] sm:$0xff] }
  0x27   :  { %344 = vst [vmem:[#allocation7 + $0x50] sm:$0xff] %v246_v34  ;;  %345 = vst [vmem:[#allocation7 + $0x58] sm:$0xff] %v247_v35  ;;  %v249_v43 = vadd.f32 %v151_v40, %v53_v38  ;;  %v250_v44 = vadd.f32 %v152_v42, %v54_v41  ;;  %v55_v45 = vld [vmem:[#allocation2 + $0x78] sm:$0xff]  ;;  %v153_v46 = vld [vmem:[#allocation5 + $0x78] sm:$0xff] }
  0x28   :  { %v56_v47 = vld [vmem:[#allocation2 + $0x80] sm:$0xff]  ;;  %346 = vst [vmem:[#allocation7 + $0x60] sm:$0xff] %v248_v39  ;;  %v251_v48 = vadd.f32 %v153_v46, %v55_v45  ;;  %v154_v49 = vld [vmem:[#allocation5 + $0x80] sm:$0xff]  ;;  %v57_v50 = vld [vmem:[#allocation2 + $0x88] sm:$0xff] }
  0x29   :  { %v155_v51 = vld [vmem:[#allocation5 + $0x88] sm:$0xff]  ;;  %347 = vst [vmem:[#allocation7 + $0x68] sm:$0xff] %v249_v43  ;;  %348 = vst [vmem:[#allocation7 + $0x70] sm:$0xff] %v250_v44  ;;  %v252_v52 = vadd.f32 %v154_v49, %v56_v47  ;;  %v58_v54 = vld [vmem:[#allocation2 + $0x90] sm:$0xff] }
  0x2a   :  { %v253_v53 = vadd.f32 %v155_v51, %v57_v50  ;;  %v156_v55 = vld [vmem:[#allocation5 + $0x90] sm:$0xff]  ;;  %v59_v56 = vld [vmem:[#allocation2 + $0x98] sm:$0xff]  ;;  %349 = vst [vmem:[#allocation7 + $0x78] sm:$0xff] %v251_v48  ;;  %v157_v58 = vld [vmem:[#allocation5 + $0x98] sm:$0xff] }
  0x2b   :  { %v254_v57 = vadd.f32 %v156_v55, %v58_v54  ;;  %v60_v59 = vld [vmem:[#allocation2 + $0xa0] sm:$0xff]  ;;  %v158_v60 = vld [vmem:[#allocation5 + $0xa0] sm:$0xff]  ;;  %350 = vst [vmem:[#allocation7 + $0x80] sm:$0xff] %v252_v52  ;;  %v255_v61 = vadd.f32 %v157_v58, %v59_v56  ;;  %v61_v63 = vld [vmem:[#allocation2 + $0xa8] sm:$0xff] }
  0x2c   :  { %351 = vst [vmem:[#allocation7 + $0x88] sm:$0xff] %v253_v53  ;;  %v256_v62 = vadd.f32 %v158_v60, %v60_v59  ;;  %v159_v0 = vld [vmem:[#allocation5 + $0xa8] sm:$0xff]  ;;  %v62_v1 = vld [vmem:[#allocation2 + $0xb0] sm:$0xff]  ;;  %v160_v3 = vld [vmem:[#allocation5 + $0xb0] sm:$0xff] }
  0x2d   :  { %352 = vst [vmem:[#allocation7 + $0x90] sm:$0xff] %v254_v57  ;;  %v257_v2 = vadd.f32 %v159_v0, %v61_v63  ;;  %v63_v4 = vld [vmem:[#allocation2 + $0xb8] sm:$0xff]  ;;  %v161_v5 = vld [vmem:[#allocation5 + $0xb8] sm:$0xff]  ;;  %353 = vst [vmem:[#allocation7 + $0x98] sm:$0xff] %v255_v61  ;;  %v258_v6 = vadd.f32 %v160_v3, %v62_v1 }
  0x2e   :  { %354 = vst [vmem:[#allocation7 + $0xa0] sm:$0xff] %v256_v62  ;;  %v259_v7 = vadd.f32 %v161_v5, %v63_v4  ;;  %v64_v8 = vld [vmem:[#allocation2 + $0xc0] sm:$0xff]  ;;  %v162_v9 = vld [vmem:[#allocation5 + $0xc0] sm:$0xff]  ;;  %v65_v10 = vld [vmem:[#allocation2 + $0xc8] sm:$0xff] }
  0x2f   :  { %355 = vst [vmem:[#allocation7 + $0xa8] sm:$0xff] %v257_v2  ;;  %v260_v11 = vadd.f32 %v162_v9, %v64_v8  ;;  %v163_v12 = vld [vmem:[#allocation5 + $0xc8] sm:$0xff]  ;;  %v66_v13 = vld [vmem:[#allocation2 + $0xd0] sm:$0xff]  ;;  %v164_v14 = vld [vmem:[#allocation5 + $0xd0] sm:$0xff] }
  0x30   :  { %356 = vst [vmem:[#allocation7 + $0xb0] sm:$0xff] %v258_v6  ;;  %357 = vst [vmem:[#allocation7 + $0xb8] sm:$0xff] %v259_v7  ;;  %v261_v15 = vadd.f32 %v163_v12, %v65_v10  ;;  %v262_v16 = vadd.f32 %v164_v14, %v66_v13  ;;  %v67_v17 = vld [vmem:[#allocation2 + $0xd8] sm:$0xff]  ;;  %v165_v18 = vld [vmem:[#allocation5 + $0xd8] sm:$0xff] }
  0x31   :  { %v68_v19 = vld [vmem:[#allocation2 + $0xe0] sm:$0xff]  ;;  %358 = vst [vmem:[#allocation7 + $0xc0] sm:$0xff] %v260_v11  ;;  %v263_v20 = vadd.f32 %v165_v18, %v67_v17  ;;  %v166_v21 = vld [vmem:[#allocation5 + $0xe0] sm:$0xff]  ;;  %v69_v22 = vld [vmem:[#allocation2 + $0xe8] sm:$0xff] }
  0x32   :  { %v167_v23 = vld [vmem:[#allocation5 + $0xe8] sm:$0xff]  ;;  %359 = vst [vmem:[#allocation7 + $0xc8] sm:$0xff] %v261_v15  ;;  %360 = vst [vmem:[#allocation7 + $0xd0] sm:$0xff] %v262_v16  ;;  %v264_v24 = vadd.f32 %v166_v21, %v68_v19  ;;  %v70_v26 = vld [vmem:[#allocation2 + $0xf0] sm:$0xff] }
  0x33   :  { %v265_v25 = vadd.f32 %v167_v23, %v69_v22  ;;  %v168_v27 = vld [vmem:[#allocation5 + $0xf0] sm:$0xff]  ;;  %v71_v28 = vld [vmem:[#allocation2 + $0xf8] sm:$0xff]  ;;  %361 = vst [vmem:[#allocation7 + $0xd8] sm:$0xff] %v263_v20  ;;  %v169_v30 = vld [vmem:[#allocation5 + $0xf8] sm:$0xff] }
  0x34   :  { %v266_v29 = vadd.f32 %v168_v27, %v70_v26  ;;  %v72_v31 = vld [vmem:[#allocation2 + $0x100] sm:$0xff]  ;;  %v170_v32 = vld [vmem:[#allocation5 + $0x100] sm:$0xff]  ;;  %362 = vst [vmem:[#allocation7 + $0xe0] sm:$0xff] %v264_v24  ;;  %v267_v33 = vadd.f32 %v169_v30, %v71_v28  ;;  %v73_v35 = vld [vmem:[#allocation2 + $0x108] sm:$0xff] }
  0x35   :  { %363 = vst [vmem:[#allocation7 + $0xe8] sm:$0xff] %v265_v25  ;;  %v268_v34 = vadd.f32 %v170_v32, %v72_v31  ;;  %v171_v36 = vld [vmem:[#allocation5 + $0x108] sm:$0xff]  ;;  %v74_v37 = vld [vmem:[#allocation2 + $0x110] sm:$0xff]  ;;  %v172_v39 = vld [vmem:[#allocation5 + $0x110] sm:$0xff] }
  0x36   :  { %364 = vst [vmem:[#allocation7 + $0xf0] sm:$0xff] %v266_v29  ;;  %v269_v38 = vadd.f32 %v171_v36, %v73_v35  ;;  %v75_v40 = vld [vmem:[#allocation2 + $0x118] sm:$0xff]  ;;  %v173_v41 = vld [vmem:[#allocation5 + $0x118] sm:$0xff]  ;;  %365 = vst [vmem:[#allocation7 + $0xf8] sm:$0xff] %v267_v33  ;;  %v270_v42 = vadd.f32 %v172_v39, %v74_v37 }
  0x37   :  { %366 = vst [vmem:[#allocation7 + $0x100] sm:$0xff] %v268_v34  ;;  %v271_v43 = vadd.f32 %v173_v41, %v75_v40  ;;  %v76_v44 = vld [vmem:[#allocation2 + $0x120] sm:$0xff]  ;;  %v174_v45 = vld [vmem:[#allocation5 + $0x120] sm:$0xff]  ;;  %v77_v46 = vld [vmem:[#allocation2 + $0x128] sm:$0xff] }
  0x38   :  { %367 = vst [vmem:[#allocation7 + $0x108] sm:$0xff] %v269_v38  ;;  %v272_v47 = vadd.f32 %v174_v45, %v76_v44  ;;  %v175_v48 = vld [vmem:[#allocation5 + $0x128] sm:$0xff]  ;;  %v78_v49 = vld [vmem:[#allocation2 + $0x130] sm:$0xff]  ;;  %v176_v50 = vld [vmem:[#allocation5 + $0x130] sm:$0xff] }
  0x39   :  { %368 = vst [vmem:[#allocation7 + $0x110] sm:$0xff] %v270_v42  ;;  %369 = vst [vmem:[#allocation7 + $0x118] sm:$0xff] %v271_v43  ;;  %v273_v51 = vadd.f32 %v175_v48, %v77_v46  ;;  %v274_v52 = vadd.f32 %v176_v50, %v78_v49  ;;  %v79_v53 = vld [vmem:[#allocation2 + $0x138] sm:$0xff]  ;;  %v177_v54 = vld [vmem:[#allocation5 + $0x138] sm:$0xff] }
  0x3a   :  { %v80_v55 = vld [vmem:[#allocation2 + $0x140] sm:$0xff]  ;;  %370 = vst [vmem:[#allocation7 + $0x120] sm:$0xff] %v272_v47  ;;  %v275_v56 = vadd.f32 %v177_v54, %v79_v53  ;;  %v178_v57 = vld [vmem:[#allocation5 + $0x140] sm:$0xff]  ;;  %v81_v58 = vld [vmem:[#allocation2 + $0x148] sm:$0xff] }
  0x3b   :  { %v179_v59 = vld [vmem:[#allocation5 + $0x148] sm:$0xff]  ;;  %371 = vst [vmem:[#allocation7 + $0x128] sm:$0xff] %v273_v51  ;;  %372 = vst [vmem:[#allocation7 + $0x130] sm:$0xff] %v274_v52  ;;  %v276_v60 = vadd.f32 %v178_v57, %v80_v55  ;;  %v82_v62 = vld [vmem:[#allocation2 + $0x150] sm:$0xff] }
  0x3c   :  { %v277_v61 = vadd.f32 %v179_v59, %v81_v58  ;;  %v180_v63 = vld [vmem:[#allocation5 + $0x150] sm:$0xff]  ;;  %v83_v0 = vld [vmem:[#allocation2 + $0x158] sm:$0xff]  ;;  %373 = vst [vmem:[#allocation7 + $0x138] sm:$0xff] %v275_v56  ;;  %v181_v2 = vld [vmem:[#allocation5 + $0x158] sm:$0xff] }
  0x3d   :  { %v278_v1 = vadd.f32 %v180_v63, %v82_v62  ;;  %v84_v3 = vld [vmem:[#allocation2 + $0x160] sm:$0xff]  ;;  %v182_v4 = vld [vmem:[#allocation5 + $0x160] sm:$0xff]  ;;  %374 = vst [vmem:[#allocation7 + $0x140] sm:$0xff] %v276_v60  ;;  %v279_v5 = vadd.f32 %v181_v2, %v83_v0  ;;  %v85_v7 = vld [vmem:[#allocation2 + $0x168] sm:$0xff] }
  0x3e   :  { %375 = vst [vmem:[#allocation7 + $0x148] sm:$0xff] %v277_v61  ;;  %v280_v6 = vadd.f32 %v182_v4, %v84_v3  ;;  %v183_v8 = vld [vmem:[#allocation5 + $0x168] sm:$0xff]  ;;  %v86_v9 = vld [vmem:[#allocation2 + $0x170] sm:$0xff]  ;;  %v184_v11 = vld [vmem:[#allocation5 + $0x170] sm:$0xff] }
  0x3f   :  { %376 = vst [vmem:[#allocation7 + $0x150] sm:$0xff] %v278_v1  ;;  %v281_v10 = vadd.f32 %v183_v8, %v85_v7  ;;  %v87_v12 = vld [vmem:[#allocation2 + $0x178] sm:$0xff]  ;;  %v185_v13 = vld [vmem:[#allocation5 + $0x178] sm:$0xff]  ;;  %377 = vst [vmem:[#allocation7 + $0x158] sm:$0xff] %v279_v5  ;;  %v282_v14 = vadd.f32 %v184_v11, %v86_v9 }
  0x40   :  { %378 = vst [vmem:[#allocation7 + $0x160] sm:$0xff] %v280_v6  ;;  %v283_v15 = vadd.f32 %v185_v13, %v87_v12  ;;  %v88_v16 = vld [vmem:[#allocation2 + $0x180] sm:$0xff]  ;;  %v186_v17 = vld [vmem:[#allocation5 + $0x180] sm:$0xff]  ;;  %v89_v18 = vld [vmem:[#allocation2 + $0x188] sm:$0xff] }
  0x41   :  { %379 = vst [vmem:[#allocation7 + $0x168] sm:$0xff] %v281_v10  ;;  %v284_v19 = vadd.f32 %v186_v17, %v88_v16  ;;  %v187_v20 = vld [vmem:[#allocation5 + $0x188] sm:$0xff]  ;;  %v90_v21 = vld [vmem:[#allocation2 + $0x190] sm:$0xff]  ;;  %v188_v22 = vld [vmem:[#allocation5 + $0x190] sm:$0xff] }
  0x42   :  { %380 = vst [vmem:[#allocation7 + $0x170] sm:$0xff] %v282_v14  ;;  %381 = vst [vmem:[#allocation7 + $0x178] sm:$0xff] %v283_v15  ;;  %v285_v23 = vadd.f32 %v187_v20, %v89_v18  ;;  %v286_v24 = vadd.f32 %v188_v22, %v90_v21  ;;  %v91_v25 = vld [vmem:[#allocation2 + $0x198] sm:$0xff]  ;;  %v189_v26 = vld [vmem:[#allocation5 + $0x198] sm:$0xff] }
  0x43   :  { %v92_v27 = vld [vmem:[#allocation2 + $0x1a0] sm:$0xff]  ;;  %382 = vst [vmem:[#allocation7 + $0x180] sm:$0xff] %v284_v19  ;;  %v287_v28 = vadd.f32 %v189_v26, %v91_v25  ;;  %v190_v29 = vld [vmem:[#allocation5 + $0x1a0] sm:$0xff]  ;;  %v93_v30 = vld [vmem:[#allocation2 + $0x1a8] sm:$0xff] }
  0x44   :  { %v191_v31 = vld [vmem:[#allocation5 + $0x1a8] sm:$0xff]  ;;  %383 = vst [vmem:[#allocation7 + $0x188] sm:$0xff] %v285_v23  ;;  %384 = vst [vmem:[#allocation7 + $0x190] sm:$0xff] %v286_v24  ;;  %v288_v32 = vadd.f32 %v190_v29, %v92_v27  ;;  %v94_v34 = vld [vmem:[#allocation2 + $0x1b0] sm:$0xff] }
  0x45   :  { %v289_v33 = vadd.f32 %v191_v31, %v93_v30  ;;  %v192_v35 = vld [vmem:[#allocation5 + $0x1b0] sm:$0xff]  ;;  %v95_v36 = vld [vmem:[#allocation2 + $0x1b8] sm:$0xff]  ;;  %385 = vst [vmem:[#allocation7 + $0x198] sm:$0xff] %v287_v28  ;;  %v193_v38 = vld [vmem:[#allocation5 + $0x1b8] sm:$0xff] }
  0x46   :  { %v290_v37 = vadd.f32 %v192_v35, %v94_v34  ;;  %v96_v39 = vld [vmem:[#allocation2 + $0x1c0] sm:$0xff]  ;;  %v194_v40 = vld [vmem:[#allocation5 + $0x1c0] sm:$0xff]  ;;  %386 = vst [vmem:[#allocation7 + $0x1a0] sm:$0xff] %v288_v32  ;;  %v291_v41 = vadd.f32 %v193_v38, %v95_v36  ;;  %v97_v43 = vld [vmem:[#allocation2 + $0x1c8] sm:$0xff] }
  0x47   :  { %387 = vst [vmem:[#allocation7 + $0x1a8] sm:$0xff] %v289_v33  ;;  %v292_v42 = vadd.f32 %v194_v40, %v96_v39  ;;  %v195_v44 = vld [vmem:[#allocation5 + $0x1c8] sm:$0xff]  ;;  %v98_v45 = vld [vmem:[#allocation2 + $0x1d0] sm:$0xff]  ;;  %v196_v47 = vld [vmem:[#allocation5 + $0x1d0] sm:$0xff] }
  0x48   :  { %388 = vst [vmem:[#allocation7 + $0x1b0] sm:$0xff] %v290_v37  ;;  %v293_v46 = vadd.f32 %v195_v44, %v97_v43  ;;  %v99_v48 = vld [vmem:[#allocation2 + $0x1d8] sm:$0xff]  ;;  %v197_v49 = vld [vmem:[#allocation5 + $0x1d8] sm:$0xff]  ;;  %389 = vst [vmem:[#allocation7 + $0x1b8] sm:$0xff] %v291_v41  ;;  %v294_v50 = vadd.f32 %v196_v47, %v98_v45 }
  0x49   :  { %390 = vst [vmem:[#allocation7 + $0x1c0] sm:$0xff] %v292_v42  ;;  %v295_v51 = vadd.f32 %v197_v49, %v99_v48  ;;  %v100_v52 = vld [vmem:[#allocation2 + $0x1e0] sm:$0xff]  ;;  %v198_v53 = vld [vmem:[#allocation5 + $0x1e0] sm:$0xff]  ;;  %v101_v54 = vld [vmem:[#allocation2 + $0x1e8] sm:$0xff] }
  0x4a   :  { %391 = vst [vmem:[#allocation7 + $0x1c8] sm:$0xff] %v293_v46  ;;  %v296_v55 = vadd.f32 %v198_v53, %v100_v52  ;;  %v199_v56 = vld [vmem:[#allocation5 + $0x1e8] sm:$0xff]  ;;  %v102_v57 = vld [vmem:[#allocation2 + $0x1f0] sm:$0xff]  ;;  %v200_v58 = vld [vmem:[#allocation5 + $0x1f0] sm:$0xff] }
  0x4b   :  { %392 = vst [vmem:[#allocation7 + $0x1d0] sm:$0xff] %v294_v50  ;;  %393 = vst [vmem:[#allocation7 + $0x1d8] sm:$0xff] %v295_v51  ;;  %v297_v59 = vadd.f32 %v199_v56, %v101_v54  ;;  %v298_v60 = vadd.f32 %v200_v58, %v102_v57  ;;  %v103_v61 = vld [vmem:[#allocation2 + $0x1f8] sm:$0xff]  ;;  %v201_v62 = vld [vmem:[#allocation5 + $0x1f8] sm:$0xff] }
  0x4c   :  { %v104_v63 = vld [vmem:[#allocation2 + $0x200] sm:$0xff]  ;;  %394 = vst [vmem:[#allocation7 + $0x1e0] sm:$0xff] %v296_v55  ;;  %v299_v0 = vadd.f32 %v201_v62, %v103_v61  ;;  %v202_v1 = vld [vmem:[#allocation5 + $0x200] sm:$0xff]  ;;  %v105_v2 = vld [vmem:[#allocation2 + $0x208] sm:$0xff] }
  0x4d   :  { %v203_v3 = vld [vmem:[#allocation5 + $0x208] sm:$0xff]  ;;  %395 = vst [vmem:[#allocation7 + $0x1e8] sm:$0xff] %v297_v59  ;;  %396 = vst [vmem:[#allocation7 + $0x1f0] sm:$0xff] %v298_v60  ;;  %v300_v4 = vadd.f32 %v202_v1, %v104_v63  ;;  %v106_v6 = vld [vmem:[#allocation2 + $0x210] sm:$0xff] }
  0x4e   :  { %v301_v5 = vadd.f32 %v203_v3, %v105_v2  ;;  %v204_v7 = vld [vmem:[#allocation5 + $0x210] sm:$0xff]  ;;  %v107_v8 = vld [vmem:[#allocation2 + $0x218] sm:$0xff]  ;;  %397 = vst [vmem:[#allocation7 + $0x1f8] sm:$0xff] %v299_v0  ;;  %v205_v10 = vld [vmem:[#allocation5 + $0x218] sm:$0xff] }
  0x4f   :  { %v302_v9 = vadd.f32 %v204_v7, %v106_v6  ;;  %v108_v11 = vld [vmem:[#allocation2 + $0x220] sm:$0xff]  ;;  %v206_v12 = vld [vmem:[#allocation5 + $0x220] sm:$0xff]  ;;  %398 = vst [vmem:[#allocation7 + $0x200] sm:$0xff] %v300_v4  ;;  %v303_v13 = vadd.f32 %v205_v10, %v107_v8  ;;  %v109_v15 = vld [vmem:[#allocation2 + $0x228] sm:$0xff] }
  0x50   :  { %399 = vst [vmem:[#allocation7 + $0x208] sm:$0xff] %v301_v5  ;;  %v304_v14 = vadd.f32 %v206_v12, %v108_v11  ;;  %v207_v16 = vld [vmem:[#allocation5 + $0x228] sm:$0xff]  ;;  %v110_v17 = vld [vmem:[#allocation2 + $0x230] sm:$0xff]  ;;  %v208_v19 = vld [vmem:[#allocation5 + $0x230] sm:$0xff] }
  0x51   :  { %400 = vst [vmem:[#allocation7 + $0x210] sm:$0xff] %v302_v9  ;;  %v305_v18 = vadd.f32 %v207_v16, %v109_v15  ;;  %v111_v20 = vld [vmem:[#allocation2 + $0x238] sm:$0xff]  ;;  %v209_v21 = vld [vmem:[#allocation5 + $0x238] sm:$0xff]  ;;  %401 = vst [vmem:[#allocation7 + $0x218] sm:$0xff] %v303_v13  ;;  %v306_v22 = vadd.f32 %v208_v19, %v110_v17 }
  0x52   :  { %402 = vst [vmem:[#allocation7 + $0x220] sm:$0xff] %v304_v14  ;;  %v307_v23 = vadd.f32 %v209_v21, %v111_v20  ;;  %v112_v24 = vld [vmem:[#allocation2 + $0x240] sm:$0xff]  ;;  %v210_v25 = vld [vmem:[#allocation5 + $0x240] sm:$0xff]  ;;  %v113_v26 = vld [vmem:[#allocation2 + $0x248] sm:$0xff] }
  0x53   :  { %403 = vst [vmem:[#allocation7 + $0x228] sm:$0xff] %v305_v18  ;;  %v308_v27 = vadd.f32 %v210_v25, %v112_v24  ;;  %v211_v28 = vld [vmem:[#allocation5 + $0x248] sm:$0xff]  ;;  %v114_v29 = vld [vmem:[#allocation2 + $0x250] sm:$0xff]  ;;  %v212_v30 = vld [vmem:[#allocation5 + $0x250] sm:$0xff] }
  0x54   :  { %404 = vst [vmem:[#allocation7 + $0x230] sm:$0xff] %v306_v22  ;;  %405 = vst [vmem:[#allocation7 + $0x238] sm:$0xff] %v307_v23  ;;  %v309_v31 = vadd.f32 %v211_v28, %v113_v26  ;;  %v310_v32 = vadd.f32 %v212_v30, %v114_v29  ;;  %v115_v33 = vld [vmem:[#allocation2 + $0x258] sm:$0xff]  ;;  %v213_v34 = vld [vmem:[#allocation5 + $0x258] sm:$0xff] }
  0x55   :  { %v116_v35 = vld [vmem:[#allocation2 + $0x260] sm:$0xff]  ;;  %406 = vst [vmem:[#allocation7 + $0x240] sm:$0xff] %v308_v27  ;;  %v311_v36 = vadd.f32 %v213_v34, %v115_v33  ;;  %v214_v37 = vld [vmem:[#allocation5 + $0x260] sm:$0xff]  ;;  %v117_v38 = vld [vmem:[#allocation2 + $0x268] sm:$0xff] }
  0x56   :  { %v215_v39 = vld [vmem:[#allocation5 + $0x268] sm:$0xff]  ;;  %407 = vst [vmem:[#allocation7 + $0x248] sm:$0xff] %v309_v31  ;;  %408 = vst [vmem:[#allocation7 + $0x250] sm:$0xff] %v310_v32  ;;  %v312_v40 = vadd.f32 %v214_v37, %v116_v35  ;;  %v118_v42 = vld [vmem:[#allocation2 + $0x270] sm:$0xff] }
  0x57   :  { %v313_v41 = vadd.f32 %v215_v39, %v117_v38  ;;  %v216_v43 = vld [vmem:[#allocation5 + $0x270] sm:$0xff]  ;;  %v119_v44 = vld [vmem:[#allocation2 + $0x278] sm:$0xff]  ;;  %409 = vst [vmem:[#allocation7 + $0x258] sm:$0xff] %v311_v36  ;;  %v217_v46 = vld [vmem:[#allocation5 + $0x278] sm:$0xff] }
  0x58   :  { %v314_v45 = vadd.f32 %v216_v43, %v118_v42  ;;  %v120_v47 = vld [vmem:[#allocation2 + $0x280] sm:$0xff]  ;;  %v218_v48 = vld [vmem:[#allocation5 + $0x280] sm:$0xff]  ;;  %410 = vst [vmem:[#allocation7 + $0x260] sm:$0xff] %v312_v40  ;;  %v315_v49 = vadd.f32 %v217_v46, %v119_v44  ;;  %v121_v51 = vld [vmem:[#allocation2 + $0x288] sm:$0xff] }
  0x59   :  { %411 = vst [vmem:[#allocation7 + $0x268] sm:$0xff] %v313_v41  ;;  %v316_v50 = vadd.f32 %v218_v48, %v120_v47  ;;  %v219_v52 = vld [vmem:[#allocation5 + $0x288] sm:$0xff]  ;;  %v122_v53 = vld [vmem:[#allocation2 + $0x290] sm:$0xff]  ;;  %v220_v55 = vld [vmem:[#allocation5 + $0x290] sm:$0xff] }
  0x5a   :  { %412 = vst [vmem:[#allocation7 + $0x270] sm:$0xff] %v314_v45  ;;  %v317_v54 = vadd.f32 %v219_v52, %v121_v51  ;;  %v123_v56 = vld [vmem:[#allocation2 + $0x298] sm:$0xff]  ;;  %v221_v57 = vld [vmem:[#allocation5 + $0x298] sm:$0xff]  ;;  %413 = vst [vmem:[#allocation7 + $0x278] sm:$0xff] %v315_v49  ;;  %v318_v58 = vadd.f32 %v220_v55, %v122_v53 }
  0x5b   :  { %414 = vst [vmem:[#allocation7 + $0x280] sm:$0xff] %v316_v50  ;;  %v319_v59 = vadd.f32 %v221_v57, %v123_v56  ;;  %v124_v60 = vld [vmem:[#allocation2 + $0x2a0] sm:$0xff]  ;;  %v222_v61 = vld [vmem:[#allocation5 + $0x2a0] sm:$0xff]  ;;  %v125_v62 = vld [vmem:[#allocation2 + $0x2a8] sm:$0xff] }
  0x5c   :  { %415 = vst [vmem:[#allocation7 + $0x288] sm:$0xff] %v317_v54  ;;  %v320_v63 = vadd.f32 %v222_v61, %v124_v60  ;;  %v223_v0 = vld [vmem:[#allocation5 + $0x2a8] sm:$0xff]  ;;  %v126_v1 = vld [vmem:[#allocation2 + $0x2b0] sm:$0xff]  ;;  %v224_v2 = vld [vmem:[#allocation5 + $0x2b0] sm:$0xff] }
  0x5d   :  { %416 = vst [vmem:[#allocation7 + $0x290] sm:$0xff] %v318_v58  ;;  %417 = vst [vmem:[#allocation7 + $0x298] sm:$0xff] %v319_v59  ;;  %v321_v3 = vadd.f32 %v223_v0, %v125_v62  ;;  %v322_v4 = vadd.f32 %v224_v2, %v126_v1  ;;  %v127_v5 = vld [vmem:[#allocation2 + $0x2b8] sm:$0xff]  ;;  %v225_v6 = vld [vmem:[#allocation5 + $0x2b8] sm:$0xff] }
  0x5e   :  { %v128_v7 = vld [vmem:[#allocation2 + $0x2c0] sm:$0xff]  ;;  %418 = vst [vmem:[#allocation7 + $0x2a0] sm:$0xff] %v320_v63  ;;  %v323_v8 = vadd.f32 %v225_v6, %v127_v5  ;;  %v226_v9 = vld [vmem:[#allocation5 + $0x2c0] sm:$0xff]  ;;  %v129_v10 = vld [vmem:[#allocation2 + $0x2c8] sm:$0xff] }
  0x5f   :  { %v227_v11 = vld [vmem:[#allocation5 + $0x2c8] sm:$0xff]  ;;  %419 = vst [vmem:[#allocation7 + $0x2a8] sm:$0xff] %v321_v3  ;;  %420 = vst [vmem:[#allocation7 + $0x2b0] sm:$0xff] %v322_v4  ;;  %v324_v12 = vadd.f32 %v226_v9, %v128_v7  ;;  %v130_v14 = vld [vmem:[#allocation2 + $0x2d0] sm:$0xff] }
  0x60   :  { %v325_v13 = vadd.f32 %v227_v11, %v129_v10  ;;  %v228_v15 = vld [vmem:[#allocation5 + $0x2d0] sm:$0xff]  ;;  %v131_v16 = vld [vmem:[#allocation2 + $0x2d8] sm:$0xff]  ;;  %421 = vst [vmem:[#allocation7 + $0x2b8] sm:$0xff] %v323_v8  ;;  %v229_v18 = vld [vmem:[#allocation5 + $0x2d8] sm:$0xff] }
  0x61   :  { %v326_v17 = vadd.f32 %v228_v15, %v130_v14  ;;  %v132_v19 = vld [vmem:[#allocation2 + $0x2e0] sm:$0xff]  ;;  %v230_v20 = vld [vmem:[#allocation5 + $0x2e0] sm:$0xff]  ;;  %422 = vst [vmem:[#allocation7 + $0x2c0] sm:$0xff] %v324_v12  ;;  %v327_v21 = vadd.f32 %v229_v18, %v131_v16  ;;  %v133_v23 = vld [vmem:[#allocation2 + $0x2e8] sm:$0xff] }
  0x62   :  { %423 = vst [vmem:[#allocation7 + $0x2c8] sm:$0xff] %v325_v13  ;;  %v328_v22 = vadd.f32 %v230_v20, %v132_v19  ;;  %v231_v24 = vld [vmem:[#allocation5 + $0x2e8] sm:$0xff]  ;;  %v134_v25 = vld [vmem:[#allocation2 + $0x2f0] sm:$0xff]  ;;  %v232_v27 = vld [vmem:[#allocation5 + $0x2f0] sm:$0xff] }
  0x63   :  { %424 = vst [vmem:[#allocation7 + $0x2d0] sm:$0xff] %v326_v17  ;;  %v329_v26 = vadd.f32 %v231_v24, %v133_v23  ;;  %v135_v28 = vld [vmem:[#allocation2 + $0x2f8] sm:$0xff]  ;;  %v233_v29 = vld [vmem:[#allocation5 + $0x2f8] sm:$0xff]  ;;  %425 = vst [vmem:[#allocation7 + $0x2d8] sm:$0xff] %v327_v21  ;;  %v330_v30 = vadd.f32 %v232_v27, %v134_v25 }
  0x64   :  { %426 = vst [vmem:[#allocation7 + $0x2e0] sm:$0xff] %v328_v22  ;;  %v331_v31 = vadd.f32 %v233_v29, %v135_v28  ;;  %v136_v32 = vld [vmem:[#allocation2 + $0x300] sm:$0xff]  ;;  %v234_v33 = vld [vmem:[#allocation5 + $0x300] sm:$0xff]  ;;  %v137_v34 = vld [vmem:[#allocation2 + $0x308] sm:$0xff] }
  0x65   :  { %427 = vst [vmem:[#allocation7 + $0x2e8] sm:$0xff] %v329_v26  ;;  %v332_v35 = vadd.f32 %v234_v33, %v136_v32  ;;  %v235_v36 = vld [vmem:[#allocation5 + $0x308] sm:$0xff]  ;;  %428 = vst [vmem:[#allocation7 + $0x2f0] sm:$0xff] %v330_v30 }
  0x66   :  { %429 = vst [vmem:[#allocation7 + $0x2f8] sm:$0xff] %v331_v31  ;;  %v333_v37 = vadd.f32 %v235_v36, %v137_v34 }
  0x67   :  { %430 = vst [vmem:[#allocation7 + $0x300] sm:$0xff] %v332_v35 }
  0x68   :  { %431 = vst [vmem:[#allocation7 + $0x308] sm:$0xff] %v333_v37 }
  0x69   :  { %506 = shalt.err (!%p503_p0)
}
  0x6a   :  { %443 = dma.vmem_to_hbm [thread:$0]  %s438_s1, 12544, %s561_s2, [#allocation4], %s522_s12, %s522_s12, %s523_s13  }
  0x6b   :  { %519 = dma.done.wait [#allocation4], 12544  }
  0x6c   :  { %520 = vsyncadd [#allocation4], 4294954752 }
  0x6d   :  { %447 = vsyncpa [#allocation3], 1 }
  0x6e   :  { %448 = vsyncpa [#allocation6], 1 }
  0x6f   :  { %449 = vsyncpa [#allocation4], 1 }

</bundles_post_ra>
